<compile_context>
chip_gen: v7x
topology: tpu7x:2x2x1
jax: 0.10.0
libtpu: 0.0.40
codegen_flags: <defaults>
</compile_context>

<pallas_src>
import jax
import jax.numpy as jnp
import numpy as np
from jax.experimental import pallas as pl
from jax.experimental.pallas import tpu as pltpu


def _force_energy_kernel(pos_ref, posT_ref, pf_ref, x_ref, wpos_ref, w1_ref,
                         b1_ref, w2_ref, scal_ref, out_ref):
    """One grid step == one frame.

    pos_ref   (1, N, 3)   positions (nm)                     [per-frame block]
    posT_ref  (1, 3, N)   positions transposed               [per-frame block]
    pf_ref    (1, Nf, 3)  filtered (center) positions        [per-frame block]
    x_ref     (N, H)      node-type embeddings               [grid-resident]
    wpos_ref  (3, H)      position projection * 10           [grid-resident]
    w1_ref    (H, H)      hidden weights                     [grid-resident]
    b1_ref    (1, H)      hidden bias                        [grid-resident]
    w2_ref    (1, H)      readout row (w2^T)                 [grid-resident]
    scal_ref  (4,) SMEM   [b2, t_mean, t_const, 0]
    out_ref   (1, 1, 128) energy broadcast over lanes
    """
    pos = pos_ref[0]                              # (N, 3)
    posT = posT_ref[0]                            # (3, N)
    pf = pf_ref[0]                                # (Nf, 3)
    x = x_ref[...]                                # (N, H)
    wpos = wpos_ref[...]                          # (3, H)  already * 10
    w2row = w2_ref[...]                           # (1, H)

    b2 = scal_ref[0]                              # scalar (SMEM / sreg path)
    t_mean = scal_ref[1]
    t_const = scal_ref[2]

    nf = pf.shape[0]
    n = pos.shape[0]

    # ---- pairwise squared distances (Nf, N), unrolled over 3 coords ----
    d2 = jnp.zeros((nf, n), jnp.float32)
    for k in range(3):
        dk = pf[:, k:k + 1] - posT[k:k + 1, :]    # (Nf,1) - (1,N) -> (Nf,N)
        d2 = d2 + dk * dk

    # ForceModule.update_edge_index mask, thresholded on d^2 (no sqrt):
    # (d > 0.01) & (d <= 0.5)  <=>  (d2 > 1e-4) & (d2 <= 0.25)
    mask = (d2 > 1e-4) & (d2 <= 0.25)
    # synthetic continuous-filter edge weight (stand-in for the csnet model)
    w_adj = jnp.where(mask, jnp.exp(-4.0 * d2), 0.0)            # (Nf, N)

    # ---- fold the position projection into the node features (VPU FMAs),
    #      then a single MXU matmul onto the filtered (center) nodes ----
    feat = x
    for k in range(3):
        feat = feat + pos[:, k:k + 1] * wpos[k:k + 1, :]        # (N, H)
    agg = jnp.dot(w_adj, feat, preferred_element_type=jnp.float32)  # (Nf, H)

    # node-wise readout MLP -> per-node scalar (chemical shift prediction)
    hidden = jnp.maximum(
        jnp.dot(agg, w1_ref[...], preferred_element_type=jnp.float32)
        + b1_ref[...], 0.0)                                     # (Nf, H)
    # width-1 readout as multiply + lane reduce (no 1-column MXU matmul)
    pred = jnp.sum(hidden * w2row, axis=-1, keepdims=True) + b2  # (Nf, 1)

    # ---- energy: stable closed form of the torch (Nf,Nf) broadcast sum ----
    # sum_{i,j}(p_j - t_i)^2 = Nf*sum_j(p_j - tbar)^2 + Nf*sum_i(t_i - tbar)^2
    dev = pred - t_mean
    energy = float(nf) * jnp.sum(dev * dev, keepdims=True) + t_const  # (1, 1)
    out_ref[0] = jnp.broadcast_to(energy, (1, 128))             # lane-dense store


def pack_force_model_constants(emb_table, node_types, wpos, w1, b1, w2, b2,
                               target_cs):
    """One-time setup packing (module init analog): nothing here depends on
    positions, so none of it runs in the per-call path."""
    node_feat = emb_table[node_types].astype(jnp.float32)       # (N, H)
    wpos_s = (wpos * 10.0).astype(jnp.float32)                  # fold x10 scale
    h = w1.shape[0]
    w2row = w2.reshape(1, h).astype(jnp.float32)
    nf = target_cs.shape[0]
    t_mean = jnp.sum(target_cs) / float(nf)
    t_const = float(nf) * jnp.sum((target_cs - t_mean) ** 2)
    scal = jnp.concatenate(
        [b2.reshape(1), t_mean.reshape(1), t_const.reshape(1),
         jnp.zeros((1,), jnp.float32)]).astype(jnp.float32)     # (4,) for SMEM
    return dict(node_feat=node_feat, wpos_scaled=wpos_s,
                w1=w1.astype(jnp.float32), b1=b1.astype(jnp.float32),
                w2row=w2row, scalars=scal)


def make_force_energy_fn(filter_idx, consts):
    """Returns a jitted fn: positions (F, N, 3) [nm] -> per-frame energies (F,)."""
    filter_idx = np.asarray(filter_idx)
    node_feat = consts["node_feat"]       # (N, H)
    wpos_s = consts["wpos_scaled"]        # (3, H)
    w1 = consts["w1"]                     # (H, H)
    b1 = consts["b1"]                     # (1, H)
    w2row = consts["w2row"]               # (1, H)
    scal = consts["scalars"]              # (4,)

    n, h = node_feat.shape
    nf = int(filter_idx.shape[0])

    @jax.jit
    def energy_fn(positions):
        positions = positions.astype(jnp.float32)
        f = positions.shape[0]
        # Per-batch (not per-frame) wrapper ops, amortized over all frames:
        posT = jnp.transpose(positions, (0, 2, 1))              # (F, 3, N)
        pos_f = positions[:, filter_idx, :]                     # (F, Nf, 3)

        frame = lambda blk: pl.BlockSpec(blk, lambda i: (i, 0, 0))
        const2d = lambda blk: pl.BlockSpec(blk, lambda i: (0, 0))

        out = pl.pallas_call(
            _force_energy_kernel,
            grid=(f,),
            in_specs=[
                frame((1, n, 3)),                               # pos
                frame((1, 3, n)),                               # posT
                frame((1, nf, 3)),                              # pos_f
                const2d((n, h)),                                # node features
                const2d((3, h)),                                # wpos * 10
                const2d((h, h)),                                # w1
                const2d((1, h)),                                # b1
                const2d((1, h)),                                # w2 row
                pl.BlockSpec((4,), lambda i: (0,),
                             memory_space=pltpu.MemorySpace.SMEM),
            ],
            out_specs=pl.BlockSpec((1, 1, 128), lambda i: (i, 0, 0)),
            out_shape=jax.ShapeDtypeStruct((f, 1, 128), jnp.float32),
            compiler_params=pltpu.CompilerParams(
                dimension_semantics=("parallel",)),
        )(positions, posT, pos_f, node_feat, wpos_s, w1, b1, w2row, scal)
        return out[:, 0, 0]                                     # (F,)

    return energy_fn


def _reference_energy(positions, filter_idx, emb_table, node_types,
                      wpos, w1, b1, w2, b2, target_cs):
    """Pure-JAX reference mirroring the torch semantics (sqrt mask, explicit
    (Nf,Nf) broadcast energy, un-restructured matmuls). Single frame."""
    pos = positions.astype(jnp.float32)
    pf = pos[filter_idx]
    d2 = jnp.sum((pf[:, None, :] - pos[None, :, :]) ** 2, axis=-1)
    d = jnp.sqrt(d2)
    mask = (d > 0.01) & (d <= 0.5)
    w_adj = jnp.where(mask, jnp.exp(-4.0 * d2), 0.0)
    feat = emb_table[node_types] + (pos * 10.0) @ wpos
    agg = w_adj @ feat
    hdn = jnp.maximum(agg @ w1 + b1, 0.0)
    pred = hdn @ w2 + b2                                  # (Nf, 1)
    diff = pred[:, 0][None, :] - target_cs                # torch broadcast (Nf,Nf)
    return jnp.sum(diff ** 2)


if __name__ == "__main__":
    F, N, H, NUM_TYPES = 8, 32, 32, 8      # frames, atoms, hidden dim, types
    filter_idx = np.arange(0, N, 2)        # deterministic "filter_atoms" (Nf=16)
    NF = int(filter_idx.shape[0])

    key = jax.random.PRNGKey(0)
    k_pos, k_emb, k_wpos, k_w1, k_w2, k_types, k_tgt = jax.random.split(key, 7)

    # positions in nm inside a 0.4 nm box so many pairs fall in (0.01, 0.5]
    positions = jax.random.uniform(k_pos, (F, N, 3), jnp.float32) * 0.4
    node_types = jax.random.randint(k_types, (N,), 0, NUM_TYPES)

    # deterministic synthetic model parameters
    emb_table = jax.random.normal(k_emb, (NUM_TYPES, H), jnp.float32) * 0.1
    wpos = jax.random.normal(k_wpos, (3, H), jnp.float32) * 0.05
    w1 = jax.random.normal(k_w1, (H, H), jnp.float32) * 0.1
    b1 = jnp.zeros((1, H), jnp.float32)
    w2 = jax.random.normal(k_w2, (H, 1), jnp.float32) * 0.1
    b2 = jnp.zeros((1, 1), jnp.float32)
    # ForceModule.target_cs buffer (zeros at init; nonzero here so the target
    # terms in the closed-form energy are actually exercised)
    target_cs = jax.random.normal(k_tgt, (NF, 1), jnp.float32) * 0.1

    consts = pack_force_model_constants(emb_table, node_types, wpos, w1, b1,
                                        w2, b2, target_cs)
    energy_fn = make_force_energy_fn(filter_idx, consts)
    energies = jax.block_until_ready(energy_fn(positions))      # (F,)

    ref_fn = jax.vmap(lambda p: _reference_energy(
        p, filter_idx, emb_table, node_types, wpos, w1, b1, w2, b2, target_cs))
    ref = jax.block_until_ready(ref_fn(positions))

    assert np.all(np.isfinite(np.asarray(energies)))
    np.testing.assert_allclose(np.asarray(energies), np.asarray(ref),
                               rtol=2e-2, atol=1e-4)
    print("KERNEL_OK")
</pallas_src>

<mosaic_0001>
module attributes {stable_mosaic.version = 11 : i64} {
  func.func @_force_energy_kernel(%arg0: i32, %arg1: memref<1x32x3xf32, #tpu.memory_space<vmem>>, %arg2: memref<1x3x32xf32, #tpu.memory_space<vmem>>, %arg3: memref<1x16x3xf32, #tpu.memory_space<vmem>>, %arg4: memref<32x32xf32, #tpu.memory_space<vmem>>, %arg5: memref<3x32xf32, #tpu.memory_space<vmem>>, %arg6: memref<32x32xf32, #tpu.memory_space<vmem>>, %arg7: memref<1x32xf32, #tpu.memory_space<vmem>>, %arg8: memref<1x32xf32, #tpu.memory_space<vmem>>, %arg9: memref<4xf32, #tpu.memory_space<smem>>, %arg10: memref<1x1x128xf32, #tpu.memory_space<vmem>>) attributes {dimension_semantics = [#tpu.dimension_semantics<parallel>], iteration_bounds = array<i64: 8>, scalar_prefetch = 0 : i64, scratch_operands = 0 : i64, tpu.core_type = #tpu.core_type<tc>, window_params = [{transform_indices = @transform_0, window_bounds = array<i64: 1, 32, 3>}, {transform_indices = @transform_1, window_bounds = array<i64: 1, 3, 32>}, {transform_indices = @transform_2, window_bounds = array<i64: 1, 16, 3>}, {pipeline_mode = #tpu.pipeline_mode<synchronous>, transform_indices = @transform_3, window_bounds = array<i64: 32, 32>}, {pipeline_mode = #tpu.pipeline_mode<synchronous>, transform_indices = @transform_4, window_bounds = array<i64: 3, 32>}, {pipeline_mode = #tpu.pipeline_mode<synchronous>, transform_indices = @transform_5, window_bounds = array<i64: 32, 32>}, {pipeline_mode = #tpu.pipeline_mode<synchronous>, transform_indices = @transform_6, window_bounds = array<i64: 1, 32>}, {pipeline_mode = #tpu.pipeline_mode<synchronous>, transform_indices = @transform_7, window_bounds = array<i64: 1, 32>}, {transform_indices = @transform_8, window_bounds = array<i64: 4>}, {transform_indices = @transform_9, window_bounds = array<i64: 1, 1, 128>}]} {
    %c0 = arith.constant 0 : index
    %c0_0 = arith.constant 0 : index
    %c0_1 = arith.constant 0 : index
    %0 = vector.load %arg1[%c0, %c0_0, %c0_1] : memref<1x32x3xf32, #tpu.memory_space<vmem>>, vector<1x32x3xf32>
    %1 = vector.shape_cast %0 : vector<1x32x3xf32> to vector<32x3xf32>
    %c0_2 = arith.constant 0 : index
    %c0_3 = arith.constant 0 : index
    %c0_4 = arith.constant 0 : index
    %2 = vector.load %arg2[%c0_2, %c0_3, %c0_4] : memref<1x3x32xf32, #tpu.memory_space<vmem>>, vector<1x3x32xf32>
    %3 = vector.shape_cast %2 : vector<1x3x32xf32> to vector<3x32xf32>
    %c0_5 = arith.constant 0 : index
    %c0_6 = arith.constant 0 : index
    %c0_7 = arith.constant 0 : index
    %4 = vector.load %arg3[%c0_5, %c0_6, %c0_7] : memref<1x16x3xf32, #tpu.memory_space<vmem>>, vector<1x16x3xf32>
    %5 = vector.shape_cast %4 : vector<1x16x3xf32> to vector<16x3xf32>
    %c0_8 = arith.constant 0 : index
    %c0_9 = arith.constant 0 : index
    %6 = vector.load %arg4[%c0_8, %c0_9] : memref<32x32xf32, #tpu.memory_space<vmem>>, vector<32x32xf32>
    %c0_10 = arith.constant 0 : index
    %c0_11 = arith.constant 0 : index
    %7 = vector.load %arg5[%c0_10, %c0_11] : memref<3x32xf32, #tpu.memory_space<vmem>>, vector<3x32xf32>
    %c0_12 = arith.constant 0 : index
    %c0_13 = arith.constant 0 : index
    %8 = vector.load %arg8[%c0_12, %c0_13] : memref<1x32xf32, #tpu.memory_space<vmem>>, vector<1x32xf32>
    %c0_14 = arith.constant 0 : index
    %9 = memref.load %arg9[%c0_14] : memref<4xf32, #tpu.memory_space<smem>>
    %c1 = arith.constant 1 : index
    %10 = memref.load %arg9[%c1] : memref<4xf32, #tpu.memory_space<smem>>
    %c2 = arith.constant 2 : index
    %11 = memref.load %arg9[%c2] : memref<4xf32, #tpu.memory_space<smem>>
    %cst = arith.constant 0.000000e+00 : f32
    %12 = vector.broadcast %cst : f32 to vector<16x32xf32>
    %13 = vector.extract_strided_slice %5 {offsets = [0, 0], sizes = [16, 1], strides = [1, 1]} : vector<16x3xf32> to vector<16x1xf32>
    %14 = vector.extract_strided_slice %3 {offsets = [0, 0], sizes = [1, 32], strides = [1, 1]} : vector<3x32xf32> to vector<1x32xf32>
    %15 = vector.broadcast %13 : vector<16x1xf32> to vector<16x32xf32>
    %16 = vector.broadcast %14 : vector<1x32xf32> to vector<16x32xf32>
    %17 = arith.subf %15, %16 : vector<16x32xf32>
    %18 = arith.mulf %17, %17 : vector<16x32xf32>
    %19 = arith.addf %12, %18 : vector<16x32xf32>
    %20 = vector.extract_strided_slice %5 {offsets = [0, 1], sizes = [16, 1], strides = [1, 1]} : vector<16x3xf32> to vector<16x1xf32>
    %21 = vector.extract_strided_slice %3 {offsets = [1, 0], sizes = [1, 32], strides = [1, 1]} : vector<3x32xf32> to vector<1x32xf32>
    %22 = vector.broadcast %20 : vector<16x1xf32> to vector<16x32xf32>
    %23 = vector.broadcast %21 : vector<1x32xf32> to vector<16x32xf32>
    %24 = arith.subf %22, %23 : vector<16x32xf32>
    %25 = arith.mulf %24, %24 : vector<16x32xf32>
    %26 = arith.addf %19, %25 : vector<16x32xf32>
    %27 = vector.extract_strided_slice %5 {offsets = [0, 2], sizes = [16, 1], strides = [1, 1]} : vector<16x3xf32> to vector<16x1xf32>
    %28 = vector.extract_strided_slice %3 {offsets = [2, 0], sizes = [1, 32], strides = [1, 1]} : vector<3x32xf32> to vector<1x32xf32>
    %29 = vector.broadcast %27 : vector<16x1xf32> to vector<16x32xf32>
    %30 = vector.broadcast %28 : vector<1x32xf32> to vector<16x32xf32>
    %31 = arith.subf %29, %30 : vector<16x32xf32>
    %32 = arith.mulf %31, %31 : vector<16x32xf32>
    %33 = arith.addf %26, %32 : vector<16x32xf32>
    %cst_15 = arith.constant 9.99999974E-5 : f32
    %34 = vector.broadcast %cst_15 : f32 to vector<16x32xf32>
    %35 = arith.cmpf ogt, %33, %34 : vector<16x32xf32>
    %cst_16 = arith.constant 2.500000e-01 : f32
    %36 = vector.broadcast %cst_16 : f32 to vector<16x32xf32>
    %37 = arith.cmpf ole, %33, %36 : vector<16x32xf32>
    %38 = arith.andi %35, %37 : vector<16x32xi1>
    %cst_17 = arith.constant -4.000000e+00 : f32
    %39 = vector.broadcast %cst_17 : f32 to vector<16x32xf32>
    %40 = arith.mulf %39, %33 : vector<16x32xf32>
    %41 = math.exp %40 : vector<16x32xf32>
    %cst_18 = arith.constant 0.000000e+00 : f32
    %42 = vector.broadcast %cst_18 : f32 to vector<16x32xf32>
    %43 = arith.select %38, %41, %42 : vector<16x32xi1>, vector<16x32xf32>
    %44 = vector.extract_strided_slice %1 {offsets = [0, 0], sizes = [32, 1], strides = [1, 1]} : vector<32x3xf32> to vector<32x1xf32>
    %45 = vector.extract_strided_slice %7 {offsets = [0, 0], sizes = [1, 32], strides = [1, 1]} : vector<3x32xf32> to vector<1x32xf32>
    %46 = vector.broadcast %44 : vector<32x1xf32> to vector<32x32xf32>
    %47 = vector.broadcast %45 : vector<1x32xf32> to vector<32x32xf32>
    %48 = arith.mulf %46, %47 : vector<32x32xf32>
    %49 = arith.addf %6, %48 : vector<32x32xf32>
    %50 = vector.extract_strided_slice %1 {offsets = [0, 1], sizes = [32, 1], strides = [1, 1]} : vector<32x3xf32> to vector<32x1xf32>
    %51 = vector.extract_strided_slice %7 {offsets = [1, 0], sizes = [1, 32], strides = [1, 1]} : vector<3x32xf32> to vector<1x32xf32>
    %52 = vector.broadcast %50 : vector<32x1xf32> to vector<32x32xf32>
    %53 = vector.broadcast %51 : vector<1x32xf32> to vector<32x32xf32>
    %54 = arith.mulf %52, %53 : vector<32x32xf32>
    %55 = arith.addf %49, %54 : vector<32x32xf32>
    %56 = vector.extract_strided_slice %1 {offsets = [0, 2], sizes = [32, 1], strides = [1, 1]} : vector<32x3xf32> to vector<32x1xf32>
    %57 = vector.extract_strided_slice %7 {offsets = [2, 0], sizes = [1, 32], strides = [1, 1]} : vector<3x32xf32> to vector<1x32xf32>
    %58 = vector.broadcast %56 : vector<32x1xf32> to vector<32x32xf32>
    %59 = vector.broadcast %57 : vector<1x32xf32> to vector<32x32xf32>
    %60 = arith.mulf %58, %59 : vector<32x32xf32>
    %61 = arith.addf %55, %60 : vector<32x32xf32>
    %cst_19 = arith.constant dense<0.000000e+00> : vector<16x32xf32>
    %62 = tpu.matmul %43, %61, %cst_19 {dimension_numbers = #tpu.dot_dimension_numbers<[1], [0], [0], [1], [0, 0, 1, 1], [], []>} : vector<16x32xf32>, vector<32x32xf32>, vector<16x32xf32> -> vector<16x32xf32>
    %c0_20 = arith.constant 0 : index
    %c0_21 = arith.constant 0 : index
    %63 = vector.load %arg6[%c0_20, %c0_21] : memref<32x32xf32, #tpu.memory_space<vmem>>, vector<32x32xf32>
    %cst_22 = arith.constant dense<0.000000e+00> : vector<16x32xf32>
    %64 = tpu.matmul %62, %63, %cst_22 {dimension_numbers = #tpu.dot_dimension_numbers<[1], [0], [0], [1], [0, 0, 1, 1], [], []>} : vector<16x32xf32>, vector<32x32xf32>, vector<16x32xf32> -> vector<16x32xf32>
    %c0_23 = arith.constant 0 : index
    %c0_24 = arith.constant 0 : index
    %65 = vector.load %arg7[%c0_23, %c0_24] : memref<1x32xf32, #tpu.memory_space<vmem>>, vector<1x32xf32>
    %66 = vector.broadcast %65 : vector<1x32xf32> to vector<16x32xf32>
    %67 = arith.addf %64, %66 : vector<16x32xf32>
    %cst_25 = arith.constant 0.000000e+00 : f32
    %68 = vector.broadcast %cst_25 : f32 to vector<16x32xf32>
    %69 = arith.maximumf %67, %68 : vector<16x32xf32>
    %70 = vector.broadcast %8 : vector<1x32xf32> to vector<16x32xf32>
    %71 = arith.mulf %69, %70 : vector<16x32xf32>
    %cst_26 = arith.constant dense<0.000000e+00> : vector<16xf32>
    %72 = vector.multi_reduction <add>, %71, %cst_26 [1] : vector<16x32xf32> to vector<16xf32>
    %73 = vector.shape_cast %72 : vector<16xf32> to vector<16x1xf32>
    %74 = vector.broadcast %9 : f32 to vector<16x1xf32>
    %75 = arith.addf %73, %74 : vector<16x1xf32>
    %76 = vector.broadcast %10 : f32 to vector<16x1xf32>
    %77 = arith.subf %75, %76 : vector<16x1xf32>
    %78 = arith.mulf %77, %77 : vector<16x1xf32>
    %79 = vector.shape_cast %78 : vector<16x1xf32> to vector<1x16x1xf32>
    %cst_27 = arith.constant dense<0.000000e+00> : vector<1xf32>
    %80 = vector.multi_reduction <add>, %79, %cst_27 [1, 2] : vector<1x16x1xf32> to vector<1xf32>
    %81 = vector.shape_cast %80 : vector<1xf32> to vector<1x1x1xf32>
    %82 = vector.extract %81[0, 0, 0] : f32 from vector<1x1x1xf32>
    %83 = vector.broadcast %82 : f32 to vector<1x1xf32>
    %cst_28 = arith.constant 1.600000e+01 : f32
    %84 = vector.broadcast %cst_28 : f32 to vector<1x1xf32>
    %85 = arith.mulf %84, %83 : vector<1x1xf32>
    %86 = vector.broadcast %11 : f32 to vector<1x1xf32>
    %87 = arith.addf %85, %86 : vector<1x1xf32>
    %88 = vector.shape_cast %87 : vector<1x1xf32> to vector<1x1xf32>
    %89 = vector.broadcast %88 : vector<1x1xf32> to vector<1x128xf32>
    %c0_29 = arith.constant 0 : index
    %c0_30 = arith.constant 0 : index
    %c0_31 = arith.constant 0 : index
    %90 = vector.load %arg10[%c0_29, %c0_30, %c0_31] : memref<1x1x128xf32, #tpu.memory_space<vmem>>, vector<1x1x128xf32>
    %91 = vector.shape_cast %90 : vector<1x1x128xf32> to vector<1x128xf32>
    %92 = vector.shape_cast %89 : vector<1x128xf32> to vector<1x1x128xf32>
    tpu.vector_store %arg10[%c0_29, %c0_30, %c0_31], %92 {strides = array<i32>} : memref<1x1x128xf32, #tpu.memory_space<vmem>>, vector<1x1x128xf32>,
    return
  }
  func.func @transform_0(%arg0: i32) -> (i32, i32, i32) {
    %c0_i32 = arith.constant 0 : i32
    %c0_i32_0 = arith.constant 0 : i32
    %c0_i32_1 = arith.constant 0 : i32
    return %arg0, %c0_i32, %c0_i32_0 : i32, i32, i32
  }
  func.func @transform_1(%arg0: i32) -> (i32, i32, i32) {
    %c0_i32 = arith.constant 0 : i32
    %c0_i32_0 = arith.constant 0 : i32
    %c0_i32_1 = arith.constant 0 : i32
    return %arg0, %c0_i32, %c0_i32_0 : i32, i32, i32
  }
  func.func @transform_2(%arg0: i32) -> (i32, i32, i32) {
    %c0_i32 = arith.constant 0 : i32
    %c0_i32_0 = arith.constant 0 : i32
    %c0_i32_1 = arith.constant 0 : i32
    return %arg0, %c0_i32, %c0_i32_0 : i32, i32, i32
  }
  func.func @transform_3(%arg0: i32) -> (i32, i32) {
    %c0_i32 = arith.constant 0 : i32
    %c0_i32_0 = arith.constant 0 : i32
    %c0_i32_1 = arith.constant 0 : i32
    return %c0_i32, %c0_i32_0 : i32, i32
  }
  func.func @transform_4(%arg0: i32) -> (i32, i32) {
    %c0_i32 = arith.constant 0 : i32
    %c0_i32_0 = arith.constant 0 : i32
    %c0_i32_1 = arith.constant 0 : i32
    return %c0_i32, %c0_i32_0 : i32, i32
  }
  func.func @transform_5(%arg0: i32) -> (i32, i32) {
    %c0_i32 = arith.constant 0 : i32
    %c0_i32_0 = arith.constant 0 : i32
    %c0_i32_1 = arith.constant 0 : i32
    return %c0_i32, %c0_i32_0 : i32, i32
  }
  func.func @transform_6(%arg0: i32) -> (i32, i32) {
    %c0_i32 = arith.constant 0 : i32
    %c0_i32_0 = arith.constant 0 : i32
    %c0_i32_1 = arith.constant 0 : i32
    return %c0_i32, %c0_i32_0 : i32, i32
  }
  func.func @transform_7(%arg0: i32) -> (i32, i32) {
    %c0_i32 = arith.constant 0 : i32
    %c0_i32_0 = arith.constant 0 : i32
    %c0_i32_1 = arith.constant 0 : i32
    return %c0_i32, %c0_i32_0 : i32, i32
  }
  func.func @transform_8(%arg0: i32) -> i32 {
    %c0_i32 = arith.constant 0 : i32
    %c0_i32_0 = arith.constant 0 : i32
    return %c0_i32 : i32
  }
  func.func @transform_9(%arg0: i32) -> (i32, i32, i32) {
    %c0_i32 = arith.constant 0 : i32
    %c0_i32_0 = arith.constant 0 : i32
    %c0_i32_1 = arith.constant 0 : i32
    return %arg0, %c0_i32, %c0_i32_0 : i32, i32, i32
  }
}

</mosaic_0001>

<bundles_post_ra>
// kernel: energy_fn.1
= control target key start
LH: loop header
LB: loop body
LE: loop exit
PB: predicated region body
PF: predicated region fallthrough
CT: control target
= control target key end

     0   :  { %14 = vsyncpa [#allocation3], 0  ;;  %s1049_s30 = smov 0   ;;  %s1139_s0 = inlined_call_operand.vmem [shape: f32[8,32,3], index: 0, kind: input, shape index: {}]   ;;  %s1140_s1 = inlined_call_operand.vmem [shape: f32[8,3,32], index: 1, kind: input, shape index: {}]   ;;  %s1141_s2 = inlined_call_operand.vmem [shape: f32[8,16,3], index: 2, kind: input, shape index: {}]   ;;  %s1142_s3 = inlined_call_operand.vmem [shape: f32[32,32], index: 3, kind: input, shape index: {}]   ;;  %s1143_s4 = inlined_call_operand.vmem [shape: f32[3,32], index: 4, kind: input, shape index: {}]   ;;  %s1144_s5 = inlined_call_operand.vmem [shape: f32[32,32], index: 5, kind: input, shape index: {}]   ;;  %s1145_s6 = inlined_call_operand.vmem [shape: f32[1,32], index: 6, kind: input, shape index: {}]   ;;  %s1146_s7 = inlined_call_operand.vmem [shape: f32[1,32], index: 7, kind: input, shape index: {}]   ;;  %s1147_s8 = inlined_call_operand.vmem [shape: f32[4], index: 8, kind: input, shape index: {}]   ;;  %s1148_s9 = inlined_call_operand.vmem [shape: f32[8,1,128], index: 9, kind: output, shape index: {}]  }
   0x1 LB: > { %s1055_s10 = sadd.s32 4294967295, %s993_s30   ;;  %p855_p0 = scmp.ge.s32.totalorder %s993_s30, 1  ;;  %s993_s30 = sphi %s1049_s30, %s20_s30  }
   0x2   : > { %p255_p1 = scmp.lt.s32.totalorder %s993_s30, 9  ;;  %s283_s13 = sshll.u32 %s1147_s8, 4  ;;  %s284_s13 = int_to_ptr.vmem [resolvable:$true] %s283_s13 }
   0x3   : > { %p937_p3 = scmp.eq.s32.totalorder %s1055_s10, 0  ;;  %s968_s15 = scalar_lea.vmem %s284_s13, 16 }
   0x4   : > { %p1062_p2 = pnand %p855_p0, %p255_p1  ;;  %p969_p6 = scmp.ne.s32.totalorder %s284_s13, %s968_s15 }
   0x5   : > { %p976_p10 = scmp.lt.s32.totalorder %s284_s13, %s284_s13  ;;  %p977_p11 = scmp.lt.s32.totalorder %s968_s15, %s968_s15 }
   0x6   : > { %p933_p4 = pneg %p1062_p2 }
   0x7   : > { %p978_p12 = por %p977_p11, %p976_p10 }
   0x8   : > { %p934_p5 = pnand %p937_p3, %p933_p4 }
   0xa   : > { %p970_p7 = pneg %p934_p5 }
   0xc   : > { %p971_p8 = pnand %p970_p7, %p969_p6 }
   0xe   : > { %p972_p9 = pneg %p971_p8 }
  0x10   : > { %p979_p13 = pnand %p978_p12, %p972_p9 }
  0x12   : > { %982 = shalt.err (!%p979_p13)
}
  0x13   : > { %s995_s16 = smov [#allocation2]   ;;  %319 = sbr.rel (%p1062_p2) target bundleno = 1016 (0x3f8), region = 56 }
  0x14   : > { %936 = dma.vmem_to_smem (!%p934_p5), %s284_s13, 16, %s995_s16, [#allocation3]  }
  0x1a   : > { %988 = dma.done.wait (%p937_p3), [#allocation3], 16  }
  0x1b   : > { %990 = vsyncadd (%p937_p3), [#allocation3], 4294967280 }
  0x1c   : > { %325 = sfence }
  0x1d   : > { %p363_p0 = scmp.lt.s32.totalorder %s1055_s10, 7  ;;  %v996_v0 = vmov 2   ;;  %v997_v1 = vmov 0   ;;  %v998_v4 = vmov 1   ;;  %v636_v9 = vld [vmem:[%s1144_s5] sm:$0xff]  ;;  %v637_v10 = vld [vmem:[%s1144_s5 + $0x8] sm:$0xff]  ;;  %v406_v15 = vlaneseq }
  0x1e   : > { %954 = vset.pattern.permute.xlu0 %v996_v0  ;;  %951 = vset.pattern.permute.xlu1 %v997_v1  ;;  %v638_v11 = vld [vmem:[%s1144_s5 + $0x10] sm:$0xff]  ;;  %v919_v12 = vpack.c.bf16 %v637_v10, %v636_v9  ;;  %v639_v13 = vld [vmem:[%s1144_s5 + $0x18] sm:$0xff]  ;;  %v391_v44 = vld [vmem:[%s1143_s4] sm:$0x7]  ;;  %vm554_vm2 = vcmask 261120   ;;  %s393_s13 = sld [smem:[#allocation2]] }
  0x1f   : > { %s1151_s10 = smov (!%p363_p0, %s1055_s10), 7  ;;  %v923_v14 = vpack.c.bf16 %v639_v13, %v638_v11  ;;  %v407_v18 = vshrl.u32 %v406_v15, 7  ;;  %v387_v56 = vld [vmem:[%s1142_s3] sm:$0xff]  ;;  %v388_v61 = vld [vmem:[%s1142_s3 + $0x8] sm:$0xff]  ;;  %vm752_vm7 = vcmask 7168   ;;  %s866_s15 = sld [smem:[#allocation2 + $0x2]] }
  0x20   : > { %s876_s17 = sshll.u32 %s1151_s10, 4  ;;  %s875_s21 = sshll.u32 %s1151_s10, 5  ;;  %920 = vmatprep.subr.bf16.mxu1 %v919_v12 }
  0x21   : > { %s376_s20 = scalar_lea.vmem %s1141_s2, %s876_s17  ;;  %s367_s24 = scalar_lea.vmem %s1139_s0, %s875_s21  ;;  %922 = vmatpush3.bf16.msra.mxu1 %v919_v12  ;;  %v408_v19 = vsub.s32 0, %v407_v18  ;;  %v444_v24 = vsub.s32 2, %v407_v18  ;;  %v426_v25 = vsub.s32 1, %v407_v18  ;;  %v389_v18 = vld [vmem:[%s1142_s3 + $0x10] sm:$0xff] }
  0x22   : > { %v386_v2 = vld [vmem:[%s376_s20 + $0x8] sm:$0xff]  ;;  %v385_v3 = vld [vmem:[%s376_s20] sm:$0xff]  ;;  %v383_v5 = vld [vmem:[%s367_s24 + $0x18] sm:$0xff]  ;;  %924 = vmatprep.subr.bf16.mxu1 %v923_v14  ;;  %s862_s14 = sshll.u32 %s1151_s10, 2  ;;  %s379_s19 = scalar_lea.vmem %s1148_s9, %s1151_s10 }
  0x23   : > { %439 = vperm.xlu0 %954, %v386_v2   ;;  %403 = vperm.xlu1 %951, %v386_v2   ;;  %v380_v6 = vld [vmem:[%s367_s24] sm:$0xff]  ;;  %v381_v7 = vld [vmem:[%s367_s24 + $0x8] sm:$0xff]  ;;  %v382_v8 = vld [vmem:[%s367_s24 + $0x10] sm:$0xff]  ;;  %s371_s17 = scalar_lea.vmem %s1140_s1, %s862_s14  ;;  %v489_v49 = vrot.slane %v391_v44, %v408_v19  ;;  %v517_v54 = vrot.slane %v391_v44, %v426_v25  ;;  %v545_v58 = vrot.slane %v391_v44, %v444_v24  ;;  %s865_s14 = sld [smem:[#allocation2 + $0x1]] }
  0x24   : > { %v384_v22 = vld [vmem:[%s371_s17] sm:$0x7] }
  0x25   : > { %926 = vmatpush3.bf16.msra.mxu1 %v923_v14  ;;  %v409_v23 = vrot.slane %v384_v22, %v408_v19  ;;  %v445_v29 = vrot.slane %v384_v22, %v444_v24  ;;  %v427_v30 = vrot.slane %v384_v22, %v426_v25 }
  0x27   : > { %955 = vset.pattern.permute.xlu0 %v997_v1  ;;  %952 = vset.pattern.permute.xlu1 %v998_v4 }
  0x28   : > { %421 = vperm.xlu1 %952, %v386_v2   ;;  %398 = vperm.xlu0 %955, %v385_v3  }
  0x2c   : > { %953 = vset.pattern.permute.xlu1 %v996_v0  ;;  %483 = vperm.xlu0 %955, %v383_v5  }
  0x2d   : > { %435 = vperm.xlu1 %953, %v385_v3  }
  0x30   : > { %959 = vset.pattern.permute.xlu0 %v998_v4 }
  0x31   : > { %956 = vset.pattern.permute.xlu1 %v997_v1  ;;  %417 = vperm.xlu0 %959, %v385_v3  }
  0x32   : > { %468 = vperm.xlu1 %956, %v380_v6  }
  0x35   : > { %499 = vperm.xlu0 %959, %v380_v6  }
  0x36   : > { %473 = vperm.xlu1 %956, %v381_v7  }
  0x39   : > { %507 = vperm.xlu0 %959, %v382_v8  }
  0x3a   : > { %957 = vset.pattern.permute.xlu1 %v998_v4 }
  0x3b   : > { %503 = vperm.xlu1 %957, %v381_v7  }
  0x3d   : > { %963 = vset.pattern.permute.xlu0 %v996_v0 }
  0x3e   : > { %539 = vperm.xlu0 %963, %v383_v5  }
  0x3f   : > { %958 = vset.pattern.permute.xlu1 %v997_v1 }
  0x40   : > { %478 = vperm.xlu1 %958, %v382_v8  }
  0x44   : > { %960 = vset.pattern.permute.xlu1 %v996_v0 }
  0x45   : > { %527 = vperm.xlu1 %960, %v380_v6  }
  0x49   : > { %531 = vperm.xlu1 %960, %v381_v7  }
  0x4d   : > { %961 = vset.pattern.permute.xlu1 %v998_v4 }
  0x4e   : > { %511 = vperm.xlu1 %961, %v383_v5  }
  0x52   : > { %962 = vset.pattern.permute.xlu1 %v996_v0 }
  0x53   : > { %535 = vperm.xlu1 %962, %v382_v8  }
  0xa2   : > { %v404_v16 = vpop.permute.xlu1 %403  ;;  %v440_v17 = vpop.permute.xlu0 %439 }
  0xa3   : > { %v411_v42 = vsub.f32 %v404_v16, %v409_v23  ;;  %v447_v46 = vsub.f32 %v440_v17, %v445_v29  ;;  %v390_v17 = vld [vmem:[%s1142_s3 + $0x18] sm:$0xff] }
  0xa5   : > { %v413_v50 = vmul.f32 %v411_v42, %v411_v42  ;;  %v449_v51 = vmul.f32 %v447_v46, %v447_v46 }
  0xa7   : > { %v422_v20 = vpop.permute.xlu1 %421  ;;  %v399_v21 = vpop.permute.xlu0 %398 }
  0xa8   : > { %v410_v28 = vsub.f32 %v399_v21, %v409_v23  ;;  %v429_v40 = vsub.f32 %v422_v20, %v427_v30 }
  0xaa   : > { %v412_v32 = vmul.f32 %v410_v28, %v410_v28  ;;  %v431_v47 = vmul.f32 %v429_v40, %v429_v40 }
  0xab   : > { %v484_v26 = vpop.permute.xlu0 %483 }
  0xac   : > { %v436_v27 = vpop.permute.xlu1 %435  ;;  %v433_v52 = vadd.f32 %v431_v47, %v413_v50  ;;  %v493_v11 = vmul.f32 %v489_v49, %v484_v26  ;;  %v744_v50 = vstv %s393_s13 }
  0xad   : > { %v446_v33 = vsub.f32 %v436_v27, %v445_v29 }
  0xae   : > { %v451_v59 = vadd.f32 %v449_v51, %v433_v52  ;;  %v497_v23 = vadd.f32 %v493_v11, %v390_v17  ;;  %v747_v51 = vstv %s865_s14 }
  0xaf   : > { %v448_v37 = vmul.f32 %v446_v33, %v446_v33 }
  0xb0   : > { %v418_v31 = vpop.permute.xlu0 %417  ;;  %v459_v3 = vmul.f32 -4.0, %v451_v59  ;;  %vm453_vm4 = vcmp.gt.f32.partialorder %v451_v59, 0.0001  ;;  %vm455_vm5 = vcmp.le.f32.partialorder %v451_v59, 0.25 }
  0xb1   : > { %v428_v34 = vsub.f32 %v418_v31, %v427_v30  ;;  %v469_v35 = vpop.permute.xlu1 %468  ;;  %vm457_vm6 = vmand %vm453_vm4, %vm455_vm5 }
  0xb2   : > { %v490_v55 = vmul.f32 %v489_v49, %v469_v35  ;;  %v462_v13 = vmul.f32 1.442695, %v459_v3 }
  0xb3   : > { %v430_v36 = vmul.f32 %v428_v34, %v428_v34 }
  0xb4   : > { %v500_v57 = vpop.permute.xlu0 %499  ;;  %v494_v63 = vadd.f32 %v490_v55, %v387_v56 }
  0xb5   : > { %v432_v38 = vadd.f32 %v430_v36, %v412_v32  ;;  %v474_v39 = vpop.permute.xlu1 %473  ;;  %v518_v0 = vmul.f32 %v517_v54, %v500_v57 }
  0xb6   : > { %v491_v60 = vmul.f32 %v489_v49, %v474_v39 }
  0xb7   : > { %v450_v41 = vadd.f32 %v448_v37, %v432_v38  ;;  %v522_v8 = vadd.f32 %v518_v0, %v494_v63  ;;  %v869_v38 = vld [vmem:[%s1145_s6] ss:$0 sm:$0xff] }
  0xb8   : > { %v495_v4 = vadd.f32 %v491_v60, %v388_v61  ;;  %v508_v12 = vpop.permute.xlu0 %507 }
  0xb9   : > { %v458_v43 = vmul.f32 -4.0, %v450_v41  ;;  %vm452_vm0 = vcmp.gt.f32.partialorder %v450_v41, 0.0001  ;;  %vm454_vm1 = vcmp.le.f32.partialorder %v450_v41, 0.25  ;;  %v520_v25 = vmul.f32 %v517_v54, %v508_v12 }
  0xba   : > { %v504_v45 = vpop.permute.xlu1 %503  ;;  %vm456_vm3 = vmand %vm452_vm0, %vm454_vm1 }
  0xbb   : > { %v460_v48 = vmul.f32 1.442695, %v458_v43  ;;  %v519_v1 = vmul.f32 %v517_v54, %v504_v45  ;;  %v872_v43 = vld [vmem:[%s1146_s7] ss:$0 sm:$0xff] }
  0xbd   : > { %964 = vpow2.f32 %v460_v48  ;;  %v523_v9 = vadd.f32 %v519_v1, %v495_v4  ;;  %v540_v22 = vpop.permute.xlu0 %539 }
  0xbe   : > { %966 = vpow2.f32 %v462_v13  ;;  %v549_v27 = vmul.f32 %v545_v58, %v540_v22 }
  0xbf   : > { %v479_v53 = vpop.permute.xlu1 %478 }
  0xc0   : > { %v492_v14 = vmul.f32 %v489_v49, %v479_v53 }
  0xc2   : > { %v496_v24 = vadd.f32 %v492_v14, %v389_v18 }
  0xc4   : > { %v528_v62 = vpop.permute.xlu1 %527  ;;  %v524_v29 = vadd.f32 %v520_v25, %v496_v24 }
  0xc5   : > { %v546_v5 = vmul.f32 %v545_v58, %v528_v62 }
  0xc7   : > { %v965_v2 = vpop.eup %964  ;;  %v550_v15 = vadd.f32 %v546_v5, %v522_v8 }
  0xc8   : > { %v532_v6 = vpop.permute.xlu1 %531  ;;  %v464_v7 = vsel %vm456_vm3, %v965_v2, 0.0  ;;  %v967_v34 = vpop.eup %966 }
  0xc9   : > { %v547_v10 = vmul.f32 %v545_v58, %v532_v6  ;;  %897 = vmatprep.mubr.msk.f32.mxu0 %vm554_vm2, %v464_v7  ;;  %v465_v35 = vsel %vm457_vm6, %v967_v34, 0.0  ;;  %v767_v7 = vstv %s866_s15 }
  0xcb   : > { %v551_v16 = vadd.f32 %v547_v10, %v523_v9 }
  0xcd   : > { %v512_v19 = vpop.permute.xlu1 %511  ;;  %v911_v20 = vpack.c.bf16 %v551_v16, %v550_v15 }
  0xce   : > { %v521_v21 = vmul.f32 %v517_v54, %v512_v19 }
  0xcf   : > { %912 = vmatprep.subr.bf16.mxu0 %v911_v20 }
  0xd0   : > { %914 = vmatpush3.bf16.msra.mxu0 %v911_v20  ;;  %v525_v26 = vadd.f32 %v521_v21, %v497_v23 }
  0xd2   : > { %v536_v28 = vpop.permute.xlu1 %535  ;;  %v553_v31 = vadd.f32 %v549_v27, %v525_v26 }
  0xd3   : > { %v548_v30 = vmul.f32 %v545_v58, %v536_v28 }
  0xd5   : > { %v552_v32 = vadd.f32 %v548_v30, %v524_v29 }
  0xd7   : > { %v915_v33 = vpack.c.bf16 %v553_v31, %v552_v32 }
  0xd9   : > { %916 = vmatprep.subr.bf16.mxu0 %v915_v33 }
  0xda   : > { %918 = vmatpush3.bf16.msra.mxu0 %v915_v33 }
  0xdd   : > { %898 = vmatmul.mubr.msk.f32.vlgmr.msra.gmra.mrb[0].mxu0 %vm554_vm2, %v465_v35 }
 0x1b0   : > { %v899_v36 = vpop.f32.mrb[0].mxu0 }
 0x1b1   : > { %v627_v37 = vpop.f32.mrb[1].mxu0 }
 0x1b2   : > { %908 = vmatprep.mubr.msk.f32.mxu1 %vm554_vm2, %v627_v37 }
 0x1b3   : > { %909 = vmatmul.mubr.msk.f32.vlgmr.msra.gmra.mrb[0].mxu1 %vm554_vm2, %v899_v36 }
 0x286   : > { %v910_v39 = vpop.f32.mrb[0].mxu1 }
 0x287   : > { %v725_v40 = vadd.f32 %v910_v39, %v869_v38  ;;  %v719_v41 = vpop.f32.mrb[1].mxu1 }
 0x288   : > { %v720_v42 = vadd.f32 %v869_v38, %v719_v41 }
 0x289   : > { %v729_v44 = vmax.f32 %v725_v40, 0.0 }
 0x28a   : > { %v728_v45 = vmax.f32 %v720_v42, 0.0 }
 0x28b   : > { %v737_v46 = vmul.f32 %v872_v43, %v729_v44 }
 0x28c   : > { %v736_v47 = vmul.f32 %v872_v43, %v728_v45 }
 0x28d   : > { %v741_v48 = vsel %vm554_vm2, %v737_v46, 0.0 }
 0x28e   : > { %742 = vadd.xlane.f32.xlu0 %v741_v48  ;;  %v738_v49 = vsel %vm554_vm2, %v736_v47, 0.0 }
 0x28f   : > { %739 = vadd.xlane.f32.xlu1 %v738_v49 }
 0x31b   : > { %v743_v52 = vpop.xlane.xlu0 %742 }
 0x31c   : > { %v746_v53 = vadd.f32 %v744_v50, %v743_v52  ;;  %v740_v54 = vpop.xlane.xlu1 %739 }
 0x31d   : > { %v745_v55 = vadd.f32 %v744_v50, %v740_v54 }
 0x31e   : > { %v749_v56 = vsub.f32 %v746_v53, %v747_v51 }
 0x31f   : > { %v748_v57 = vsub.f32 %v745_v55, %v747_v51 }
 0x320   : > { %v751_v58 = vmul.f32 %v749_v56, %v749_v56 }
 0x321   : > { %v750_v59 = vmul.f32 %v748_v57, %v748_v57 }
 0x322   : > { %v754_v60 = vsel %vm752_vm7, %v751_v58, 0.0 }
 0x323   : > { %v753_v61 = vsel %vm752_vm7, %v750_v59, 0.0 }
 0x324   : > { %v755_v62 = vadd.f32 %v754_v60, %v753_v61 }
 0x326   : > { %756 = vadd.xlane.f32.xlu1 %v755_v62 }
 0x3b3   : > { %v757_v63 = vpop.xlane.xlu1 %756 }
 0x3b4   : > { %v758_v0 = vrot.slane %v757_v63, 4 }
 0x3b6   : > { %v759_v1 = vadd.f32 %v758_v0, %v757_v63 }
 0x3b8   : > { %v760_v2 = vrot.slane %v759_v1, 2 }
 0x3ba   : > { %v761_v3 = vadd.f32 %v760_v2, %v759_v1 }
 0x3bc   : > { %v762_v4 = vrot.slane %v761_v3, 1 }
 0x3be   : > { %v763_v5 = vadd.f32 %v762_v4, %v761_v3 }
 0x3c0   : > { %927 = vpush %v763_v5 }
 0x3f1   : > { %s928_s16 = spop %927 }
 0x3f2   : > { %v765_v6 = vstv %s928_s16 }
 0x3f3   : > { %v766_v8 = vmul.f32 16.0, %v765_v6 }
 0x3f5   : > { %v768_v9 = vadd.f32 %v767_v7, %v766_v8 }
 0x3f7   : > { %769 = vst [vmem:[%s379_s19] sm:$0x1] %v768_v9 }
 0x3f8 PF: > { %s20_s30 = sadd.s32 1, %s993_s30  }
 0x3f9   : > { %p17_p1 = scmp.ge.s32.totalorder %s20_s30, 10  }
 0x3fb   :  { %19 = sbr.rel (!%p17_p1) target bundleno = 1 (0x1), region = 97 }
 0x402   :  { %787 = vsyncpa [#allocation3], 1 }
 0x403   :  { %789 = vsyncpa [#allocation3 + $0x1], 1 }

</bundles_post_ra>
